<compile_context>
chip_gen: v7x
topology: tpu7x:2x2x1
jax: 0.10.0
libtpu: 0.0.40
codegen_flags: <defaults>
</compile_context>

<pallas_src>
import functools

import jax
import jax.numpy as jnp
from jax import lax
from jax.experimental import pallas as pl
from jax.experimental.pallas import tpu as pltpu


def varnet_kernel(x_ref, w1_ref, b1_ref, w2_ref, b2_ref, w3_ref, b3_ref, o_ref):
    # x arrives in its natural layout [TILE_B, in_dim] (f32); cast in-kernel.
    x = x_ref[...].astype(jnp.bfloat16)                      # bf16 [TILE_B, in]

    # fc1 + relu: contract on the last axes of (w1, x) => feature-major
    # [layer, TILE_B] result; MXU bf16 operands with f32 accumulation.
    h1 = lax.dot_general(w1_ref[...], x, (((1,), (1,)), ((), ())),
                         preferred_element_type=jnp.float32)
    h1 = jnp.maximum(h1.astype(jnp.bfloat16) + b1_ref[...], 0)   # bf16 [layer, TILE_B]

    # fc2 + relu
    h2 = jnp.dot(w2_ref[...], h1, preferred_element_type=jnp.float32)
    h2 = jnp.maximum(h2.astype(jnp.bfloat16) + b2_ref[...], 0)   # bf16 [layer, TILE_B]

    # fc3 + exp  (lane-dense [1, TILE_B] result; scalar bias from SMEM, f32 math)
    v = jnp.dot(w3_ref[...], h2, preferred_element_type=jnp.float32)  # f32 [1, TILE_B]
    o_ref[...] = jnp.exp(v + b3_ref[0, 0]).astype(o_ref.dtype)


def prepare_params(params):
    """One-time parameter prep (hoisted out of the hot forward path).

    Torch layout in (w: [out, in], b: [out]); returns bf16 MXU operands and
    column-vector biases, plus the scalar fc3 bias as a [1,1] f32 for SMEM.
    """
    w1, b1, w2, b2, w3, b3 = params
    layer_dim = w1.shape[0]
    return (
        w1.astype(jnp.bfloat16),                              # [layer, in]
        b1.astype(jnp.bfloat16).reshape(layer_dim, 1),        # [layer, 1]
        w2.astype(jnp.bfloat16),                              # [layer, layer]
        b2.astype(jnp.bfloat16).reshape(layer_dim, 1),        # [layer, 1]
        w3.astype(jnp.bfloat16),                              # [1, layer]
        b3.astype(jnp.float32).reshape(1, 1),                 # [1, 1] (SMEM scalar)
    )


@functools.partial(jax.jit, static_argnames=("tile_b",))
def var_network_forward(x, prepared, *, tile_b=8192):
    """Fused VarNetwork forward.

    x: [B, input_dims] float32 -> [B, 1] float32.
    prepared: output of prepare_params().
    """
    w1b, b1c, w2b, b2c, w3b, b3c = prepared
    B, in_dim = x.shape
    layer_dim = w1b.shape[0]

    # Lane-aligned batch tile: multiple of 128, capped by the 128-rounded batch.
    b_round = ((B + 127) // 128) * 128
    tile = max(128, (min(int(tile_b), b_round) // 128) * 128)
    num_tiles = pl.cdiv(B, tile)   # partial edge block handled by Pallas

    pinned = lambda shape: pl.BlockSpec(shape, lambda i: (0, 0))

    flops = 2 * B * (in_dim * layer_dim + layer_dim * layer_dim + layer_dim)
    bytes_accessed = (
        B * in_dim * 4 + B * 4                                    # x in, out
        + 2 * (w1b.size + w2b.size + w3b.size + b1c.size + b2c.size) + 4)

    out = pl.pallas_call(
        varnet_kernel,
        out_shape=jax.ShapeDtypeStruct((1, B), jnp.float32),
        grid=(num_tiles,),
        in_specs=[
            pl.BlockSpec((tile, in_dim), lambda i: (i, 0)),       # x tile (streamed)
            pinned((layer_dim, in_dim)),                          # w1 (VMEM-resident)
            pinned((layer_dim, 1)),                               # b1
            pinned((layer_dim, layer_dim)),                       # w2
            pinned((layer_dim, 1)),                               # b2
            pinned((1, layer_dim)),                               # w3
            pl.BlockSpec(memory_space=pltpu.MemorySpace.SMEM),    # b3 scalar
        ],
        out_specs=pl.BlockSpec((1, tile), lambda i: (0, i)),      # lane-dense output
        compiler_params=pltpu.CompilerParams(
            dimension_semantics=("parallel",),
            vmem_limit_bytes=32 * 1024 * 1024,
        ),
        cost_estimate=pl.CostEstimate(
            flops=flops, transcendentals=B, bytes_accessed=bytes_accessed),
    )(x, w1b, b1c, w2b, b2c, w3b, b3c)

    return out[0].reshape(B, 1)


def init_params(key, input_dims, layer_dim):
    """Deterministic synthetic parameters in torch layout (w: [out,in], b: [out])."""
    k1, k2, k3, k4, k5, k6 = jax.random.split(key, 6)
    w1 = jax.random.normal(k1, (layer_dim, input_dims), jnp.float32) * 0.1
    b1 = jax.random.normal(k2, (layer_dim,), jnp.float32) * 0.1
    w2 = jax.random.normal(k3, (layer_dim, layer_dim), jnp.float32) * 0.1
    b2 = jax.random.normal(k4, (layer_dim,), jnp.float32) * 0.1
    w3 = jax.random.normal(k5, (1, layer_dim), jnp.float32) * 0.1
    b3 = jax.random.normal(k6, (1,), jnp.float32) * 0.1
    return (w1, b1, w2, b2, w3, b3)


def var_network_ref(x, params):
    """Pure-JAX f32 reference (matches the PyTorch forward)."""
    w1, b1, w2, b2, w3, b3 = params
    h1 = jnp.maximum(x @ w1.T + b1[None, :], 0.0)
    h2 = jnp.maximum(h1 @ w2.T + b2[None, :], 0.0)
    return jnp.exp(h2 @ w3.T + b3[None, :])


if __name__ == "__main__":
    key = jax.random.PRNGKey(0)
    k_x, k_p = jax.random.split(key)

    batch = 8
    input_dims = 16
    layer_dim = 32

    x = jax.random.normal(k_x, (batch, input_dims), jnp.float32)
    params = init_params(k_p, input_dims, layer_dim)
    prepared = prepare_params(params)   # one-time prep, outside the hot loop

    out = var_network_forward(x, prepared)
    out = jax.block_until_ready(out)

    ref = var_network_ref(x, params)
    assert out.shape == (batch, 1), out.shape
    # bf16 MXU operands / bf16 elementwise with f32 accumulation: relaxed tol.
    assert jnp.allclose(out, ref, rtol=2e-2, atol=2e-2), "mismatch vs reference"

    print("KERNEL_OK")
</pallas_src>

<mosaic_0001>
module attributes {stable_mosaic.version = 11 : i64} {
  func.func @varnet_kernel(%arg0: i32, %arg1: memref<128x16xf32, #tpu.memory_space<vmem>>, %arg2: memref<32x16xbf16, #tpu.memory_space<vmem>>, %arg3: memref<32x1xbf16, #tpu.memory_space<vmem>>, %arg4: memref<32x32xbf16, #tpu.memory_space<vmem>>, %arg5: memref<32x1xbf16, #tpu.memory_space<vmem>>, %arg6: memref<1x32xbf16, #tpu.memory_space<vmem>>, %arg7: memref<1x1xf32, #tpu.memory_space<smem>>, %arg8: memref<1x128xf32, #tpu.memory_space<vmem>>) attributes {dimension_semantics = [#tpu.dimension_semantics<parallel>], iteration_bounds = array<i64: 1>, scalar_prefetch = 0 : i64, scratch_operands = 0 : i64, tpu.core_type = #tpu.core_type<tc>, window_params = [{transform_indices = @transform_0, window_bounds = array<i64: 128, 16>}, {pipeline_mode = #tpu.pipeline_mode<synchronous>, transform_indices = @transform_1, window_bounds = array<i64: 32, 16>}, {pipeline_mode = #tpu.pipeline_mode<synchronous>, transform_indices = @transform_2, window_bounds = array<i64: 32, 1>}, {pipeline_mode = #tpu.pipeline_mode<synchronous>, transform_indices = @transform_3, window_bounds = array<i64: 32, 32>}, {pipeline_mode = #tpu.pipeline_mode<synchronous>, transform_indices = @transform_4, window_bounds = array<i64: 32, 1>}, {pipeline_mode = #tpu.pipeline_mode<synchronous>, transform_indices = @transform_5, window_bounds = array<i64: 1, 32>}, {transform_indices = @transform_6, window_bounds = array<i64: 1, 1>}, {transform_indices = @transform_7, window_bounds = array<i64: 1, 128>}]} {
    %c0 = arith.constant 0 : index
    %c0_0 = arith.constant 0 : index
    %0 = vector.load %arg1[%c0, %c0_0] : memref<128x16xf32, #tpu.memory_space<vmem>>, vector<128x16xf32>
    %1 = arith.truncf %0 : vector<128x16xf32> to vector<128x16xbf16>
    %c0_1 = arith.constant 0 : index
    %c0_2 = arith.constant 0 : index
    %2 = vector.load %arg2[%c0_1, %c0_2] : memref<32x16xbf16, #tpu.memory_space<vmem>>, vector<32x16xbf16>
    %cst = arith.constant dense<0.000000e+00> : vector<32x128xf32>
    %3 = tpu.matmul %2, %1, %cst {dimension_numbers = #tpu.dot_dimension_numbers<[1], [1], [0], [0], [0, 0, 1, 0], [], []>} : vector<32x16xbf16>, vector<128x16xbf16>, vector<32x128xf32> -> vector<32x128xf32>
    %4 = arith.truncf %3 : vector<32x128xf32> to vector<32x128xbf16>
    %c0_3 = arith.constant 0 : index
    %c0_4 = arith.constant 0 : index
    %5 = vector.load %arg3[%c0_3, %c0_4] : memref<32x1xbf16, #tpu.memory_space<vmem>>, vector<32x1xbf16>
    %6 = vector.broadcast %5 : vector<32x1xbf16> to vector<32x128xbf16>
    %7 = arith.addf %4, %6 : vector<32x128xbf16>
    %cst_5 = arith.constant 0.000000e+00 : bf16
    %8 = vector.broadcast %cst_5 : bf16 to vector<32x128xbf16>
    %9 = arith.maximumf %7, %8 : vector<32x128xbf16>
    %c0_6 = arith.constant 0 : index
    %c0_7 = arith.constant 0 : index
    %10 = vector.load %arg4[%c0_6, %c0_7] : memref<32x32xbf16, #tpu.memory_space<vmem>>, vector<32x32xbf16>
    %cst_8 = arith.constant dense<0.000000e+00> : vector<32x128xf32>
    %11 = tpu.matmul %10, %9, %cst_8 {dimension_numbers = #tpu.dot_dimension_numbers<[1], [0], [0], [1], [0, 0, 1, 1], [], []>} : vector<32x32xbf16>, vector<32x128xbf16>, vector<32x128xf32> -> vector<32x128xf32>
    %12 = arith.truncf %11 : vector<32x128xf32> to vector<32x128xbf16>
    %c0_9 = arith.constant 0 : index
    %c0_10 = arith.constant 0 : index
    %13 = vector.load %arg5[%c0_9, %c0_10] : memref<32x1xbf16, #tpu.memory_space<vmem>>, vector<32x1xbf16>
    %14 = vector.broadcast %13 : vector<32x1xbf16> to vector<32x128xbf16>
    %15 = arith.addf %12, %14 : vector<32x128xbf16>
    %cst_11 = arith.constant 0.000000e+00 : bf16
    %16 = vector.broadcast %cst_11 : bf16 to vector<32x128xbf16>
    %17 = arith.maximumf %15, %16 : vector<32x128xbf16>
    %c0_12 = arith.constant 0 : index
    %c0_13 = arith.constant 0 : index
    %18 = vector.load %arg6[%c0_12, %c0_13] : memref<1x32xbf16, #tpu.memory_space<vmem>>, vector<1x32xbf16>
    %cst_14 = arith.constant dense<0.000000e+00> : vector<1x128xf32>
    %19 = tpu.matmul %18, %17, %cst_14 {dimension_numbers = #tpu.dot_dimension_numbers<[1], [0], [0], [1], [0, 0, 1, 1], [], []>} : vector<1x32xbf16>, vector<32x128xbf16>, vector<1x128xf32> -> vector<1x128xf32>
    %c0_15 = arith.constant 0 : index
    %c0_16 = arith.constant 0 : index
    %20 = memref.load %arg7[%c0_15, %c0_16] : memref<1x1xf32, #tpu.memory_space<smem>>
    %21 = vector.broadcast %20 : f32 to vector<1x128xf32>
    %22 = arith.addf %19, %21 : vector<1x128xf32>
    %23 = math.exp %22 : vector<1x128xf32>
    %c0_17 = arith.constant 0 : index
    %c0_18 = arith.constant 0 : index
    %24 = vector.load %arg8[%c0_17, %c0_18] : memref<1x128xf32, #tpu.memory_space<vmem>>, vector<1x128xf32>
    tpu.vector_store %arg8[%c0_17, %c0_18], %23 {strides = array<i32>} : memref<1x128xf32, #tpu.memory_space<vmem>>, vector<1x128xf32>,
    return
  }
  func.func @transform_0(%arg0: i32) -> (i32, i32) {
    %c0_i32 = arith.constant 0 : i32
    %c0_i32_0 = arith.constant 0 : i32
    return %arg0, %c0_i32 : i32, i32
  }
  func.func @transform_1(%arg0: i32) -> (i32, i32) {
    %c0_i32 = arith.constant 0 : i32
    %c0_i32_0 = arith.constant 0 : i32
    %c0_i32_1 = arith.constant 0 : i32
    return %c0_i32, %c0_i32_0 : i32, i32
  }
  func.func @transform_2(%arg0: i32) -> (i32, i32) {
    %c0_i32 = arith.constant 0 : i32
    %c0_i32_0 = arith.constant 0 : i32
    %c0_i32_1 = arith.constant 0 : i32
    return %c0_i32, %c0_i32_0 : i32, i32
  }
  func.func @transform_3(%arg0: i32) -> (i32, i32) {
    %c0_i32 = arith.constant 0 : i32
    %c0_i32_0 = arith.constant 0 : i32
    %c0_i32_1 = arith.constant 0 : i32
    return %c0_i32, %c0_i32_0 : i32, i32
  }
  func.func @transform_4(%arg0: i32) -> (i32, i32) {
    %c0_i32 = arith.constant 0 : i32
    %c0_i32_0 = arith.constant 0 : i32
    %c0_i32_1 = arith.constant 0 : i32
    return %c0_i32, %c0_i32_0 : i32, i32
  }
  func.func @transform_5(%arg0: i32) -> (i32, i32) {
    %c0_i32 = arith.constant 0 : i32
    %c0_i32_0 = arith.constant 0 : i32
    %c0_i32_1 = arith.constant 0 : i32
    return %c0_i32, %c0_i32_0 : i32, i32
  }
  func.func @transform_6(%arg0: i32) -> (i32, i32) {
    %c0_i32 = arith.constant 0 : i32
    %c0_i32_0 = arith.constant 0 : i32
    %c0_i32_1 = arith.constant 0 : i32
    return %c0_i32, %c0_i32_0 : i32, i32
  }
  func.func @transform_7(%arg0: i32) -> (i32, i32) {
    %c0_i32 = arith.constant 0 : i32
    %c0_i32_0 = arith.constant 0 : i32
    return %c0_i32, %arg0 : i32, i32
  }
}

</mosaic_0001>

<bundles_post_ra>
// kernel: var_network_forward.1
= control target key start
LH: loop header
LB: loop body
LE: loop exit
PB: predicated region body
PF: predicated region fallthrough
CT: control target
= control target key end

     0   :  { %vm67_vm0 = vcmask 130048   ;;  %v531_v5 = vmov 0   ;;  %s705_s0 = inlined_call_operand.vmem [shape: f32[8,16], index: 0, kind: input, shape index: {}]   ;;  %s706_s1 = inlined_call_operand.vmem [shape: bf16[32,16], index: 1, kind: input, shape index: {}]   ;;  %s707_s2 = inlined_call_operand.vmem [shape: bf16[32,1], index: 2, kind: input, shape index: {}]   ;;  %s708_s3 = inlined_call_operand.vmem [shape: bf16[32,32], index: 3, kind: input, shape index: {}]   ;;  %s709_s4 = inlined_call_operand.vmem [shape: bf16[32,1], index: 4, kind: input, shape index: {}]   ;;  %s710_s5 = inlined_call_operand.vmem [shape: bf16[1,32], index: 5, kind: input, shape index: {}]   ;;  %s711_s6 = inlined_call_operand.<no memory space> [shape: f32[1,1], index: 6, kind: input, shape index: {}]   ;;  %s712_s7 = inlined_call_operand.hbm [shape: f32[1,8], index: 7, kind: output, shape index: {}]  }
   0x1   :  { %v29_v0 = vld [vmem:[%s705_s0] sm:$0xff]  ;;  %v30_v1 = vld [vmem:[%s705_s0 + $0x8] sm:$0xff]  ;;  %v31_v2 = vld [vmem:[%s705_s0 + $0x10] sm:$0xff]  ;;  %500 = vset.pattern.permute.xlu1 %v531_v5  ;;  %499 = vset.pattern.permute.xlu0 %v531_v5 }
   0x2   :  { %v45_v3 = vpack.c.bf16 %v30_v1, %v29_v0  ;;  %v32_v4 = vld [vmem:[%s705_s0 + $0x18] sm:$0xff]  ;;  %v33_v8 = vld [vmem:[%s705_s0 + $0x20] sm:$0xff]  ;;  %v34_v9 = vld [vmem:[%s705_s0 + $0x28] sm:$0xff] }
   0x3   :  { %v46_v6 = vpack.c.bf16 %v32_v4, %v31_v2  ;;  %v501_v10 = vld [vmem:[%s706_s1] sm:$0xff]   ;;  %v151_v11 = vld [vmem:[%s707_s2 + $0x8] sm:$0xf]  ;;  %v47_v14 = vpack.c.bf16 %v34_v9, %v33_v8  ;;  %v152_v15 = vld [vmem:[%s707_s2 + $0xc] sm:$0xf] }
   0x4   :  { %486 = vmatprep.subr.msk.bf16.mxu0 %vm67_vm0, %v45_v3  ;;  %v75_v7 = vsel %vm67_vm0, %v45_v3, 0  ;;  %466 = vmatprep.mubr.msk.bf16.mxu0 %vm67_vm0, %v501_v10  ;;  %v149_v12 = vld [vmem:[%s707_s2] sm:$0xf]  ;;  %v150_v16 = vld [vmem:[%s707_s2 + $0x4] sm:$0xf] }
   0x5   :  { %451 = vmatpush3.bf16.xpose.msra.mxu0 %v75_v7  ;;  %179 = vperm.xlu1 %500, %v151_v11   ;;  %v78_v13 = vsel %vm67_vm0, %v46_v6, 0 }
   0x6   :  { %487 = vmatprep.subr.msk.bf16.mxu0 %vm67_vm0, %v46_v6  ;;  %155 = vperm.xlu0 %499, %v149_v12  }
   0x9   :  { %191 = vperm.xlu1 %500, %v152_v15  }
   0xd   :  { %453 = vmatpush3.bf16.xpose.msra.mxu0 %v78_v13 }
   0xe   :  { %13 = vsyncpa [#allocation4], 0  ;;  %488 = vmatprep.subr.msk.bf16.mxu0 %vm67_vm0, %v47_v14  ;;  %167 = vperm.xlu0 %499, %v150_v16   ;;  %v290_v17 = vld [vmem:[%s709_s4 + $0x4] sm:$0xf]  ;;  %v35_v18 = vld [vmem:[%s705_s0 + $0x30] sm:$0xff]  ;;  %v81_v21 = vsel %vm67_vm0, %v47_v14, 0  ;;  %v161_v46 = vlaneseq }
   0xf   :  { %v36_v19 = vld [vmem:[%s705_s0 + $0x38] sm:$0xff]  ;;  %v289_v20 = vld [vmem:[%s709_s4] sm:$0xf]  ;;  %307 = vperm.xlu1 %500, %v290_v17   ;;  %v292_v23 = vld [vmem:[%s709_s4 + $0xc] sm:$0xf]  ;;  %vm231_vm1 = vcmask 261120  }
  0x10   :  { %v48_v22 = vpack.c.bf16 %v36_v19, %v35_v18  ;;  %v291_v24 = vld [vmem:[%s709_s4 + $0x8] sm:$0xf]  ;;  %v37_v25 = vld [vmem:[%s705_s0 + $0x40] sm:$0xff]  ;;  %v39_v29 = vld [vmem:[%s705_s0 + $0x50] sm:$0xff]  ;;  %v532_v44 = vmov 839922192  }
  0x11   :  { %v38_v26 = vld [vmem:[%s705_s0 + $0x48] sm:$0xff]  ;;  %v40_v30 = vld [vmem:[%s705_s0 + $0x58] sm:$0xff]  ;;  %v41_v33 = vld [vmem:[%s705_s0 + $0x60] sm:$0xff]  ;;  %v159_v45 = vunpack.c.l.s4 %v532_v44  ;;  %v162_v49 = vshrl.u32 %v161_v46, 7  ;;  %v533_v8 = vmov 0.0   ;;  %vm534_vm2 = vmmov 0  }
  0x12   :  { %295 = vperm.xlu0 %499, %v289_v20   ;;  %v84_v27 = vsel %vm67_vm0, %v48_v22, 0  ;;  %v49_v28 = vpack.c.bf16 %v38_v26, %v37_v25  ;;  %v50_v32 = vpack.c.bf16 %v40_v30, %v39_v29  ;;  %v42_v34 = vld [vmem:[%s705_s0 + $0x68] sm:$0xff]  ;;  %v43_v37 = vld [vmem:[%s705_s0 + $0x70] sm:$0xff]  ;;  %v44_v38 = vld [vmem:[%s705_s0 + $0x78] sm:$0xff]  ;;  %v359_v30 = vstv %s711_s6  ;;  %s535_s9 = smov [#allocation3]  }
  0x13   :  { %331 = vperm.xlu1 %500, %v292_v23   ;;  %v51_v36 = vpack.c.bf16 %v42_v34, %v41_v33  ;;  %v52_v40 = vpack.c.bf16 %v44_v38, %v43_v37  ;;  %v502_v42 = vld [vmem:[%s706_s1 + $0x8] sm:$0xff]   ;;  %v503_v43 = vld [vmem:[%s708_s3] sm:$0xff]   ;;  %v160_v48 = vunpack.c.0.s8 %v159_v45  ;;  %s412_s10 = sshll.u32 %s535_s9, 4  ;;  %s413_s10 = int_to_ptr.vmem [resolvable:$true] %s412_s10 }
  0x14   :  { %v87_v31 = vsel %vm67_vm0, %v49_v28, 0  ;;  %v90_v35 = vsel %vm67_vm0, %v50_v32, 0  ;;  %474 = vmatprep.mubr.msk.bf16.mxu1 %vm231_vm1, %v503_v43  ;;  %v504_v7 = vld [vmem:[%s708_s3 + $0x8] sm:$0xff]   ;;  %v357_v29 = vld [vmem:[%s710_s5] sm:$0x1]  ;;  %s507_s11 = scalar_lea.vmem %s413_s10, 16  ;;  %p512_p1 = scmp.lt.s32.totalorder %s413_s10, %s413_s10 }
  0x15   :  { %455 = vmatpush3.bf16.xpose.msra.mxu0 %v81_v21  ;;  %v93_v39 = vsel %vm67_vm0, %v51_v36, 0  ;;  %v96_v41 = vsel %vm67_vm0, %v52_v40, 0  ;;  %v163_v51 = vsub.s32 %v160_v48, %v162_v49  ;;  %p508_p0 = scmp.ne.s32.totalorder %s413_s10, %s507_s11  ;;  %s511_s5 = scalar_lea.vmem %s413_s10, 32 }
  0x16   :  { %489 = vmatprep.subr.msk.bf16.mxu0 %vm67_vm0, %v48_v22  ;;  %319 = vperm.xlu0 %499, %v291_v24   ;;  %p513_p2 = scmp.lt.s32.totalorder %s511_s5, %s507_s11 }
  0x18   :  { %p514_p3 = por %p513_p2, %p512_p1 }
  0x1a   :  { %p515_p4 = pnand %p514_p3, %p508_p0 }
  0x1d   :  { %457 = vmatpush3.bf16.xpose.msra.mxu0 %v84_v27 }
  0x1e   :  { %490 = vmatprep.subr.msk.bf16.mxu0 %vm67_vm0, %v49_v28 }
  0x25   :  { %459 = vmatpush3.bf16.xpose.msra.mxu0 %v87_v31 }
  0x26   :  { %491 = vmatprep.subr.msk.bf16.mxu0 %vm67_vm0, %v50_v32 }
  0x2d   :  { %461 = vmatpush3.bf16.xpose.msra.mxu0 %v90_v35 }
  0x2e   :  { %492 = vmatprep.subr.msk.bf16.mxu0 %vm67_vm0, %v51_v36 }
  0x35   :  { %463 = vmatpush3.bf16.xpose.msra.mxu0 %v93_v39 }
  0x36   :  { %493 = vmatprep.subr.msk.bf16.mxu0 %vm67_vm0, %v52_v40 }
  0x3d   :  { %465 = vmatpush3.bf16.xpose.msra.mxu0 %v96_v41 }
  0x44   :  { %467 = vmatmul.mubr.msk.bf16.vlgmr.msra.gmra.mrb[0].mxu0 %vm67_vm0, %v502_v42 }
  0x84   :  { %v180_v47 = vpop.permute.xlu1 %179 }
  0x85   :  { %v156_v50 = vpop.permute.xlu0 %155  ;;  %v188_v53 = vrot.slane %v180_v47, %v163_v51 }
  0x86   :  { %v164_v56 = vrot.slane %v156_v50, %v163_v51 }
  0x88   :  { %v192_v52 = vpop.permute.xlu1 %191 }
  0x89   :  { %v200_v54 = vrot.slane %v192_v52, %v163_v51 }
  0x8b   :  { %v425_v60 = vcombine.low %v188_v53, %v200_v54 }
  0x8d   :  { %v168_v55 = vpop.permute.xlu0 %167 }
  0x8e   :  { %v176_v57 = vrot.slane %v168_v55, %v163_v51  ;;  %v308_v9 = vpop.permute.xlu1 %307 }
  0x8f   :  { %v316_v15 = vrot.slane %v308_v9, %v163_v51 }
  0x90   :  { %v424_v0 = vcombine.low %v164_v56, %v176_v57 }
  0x91   :  { %v296_v10 = vpop.permute.xlu0 %295 }
  0x92   :  { %v332_v11 = vpop.permute.xlu1 %331  ;;  %v304_v16 = vrot.slane %v296_v10, %v163_v51 }
  0x93   :  { %v340_v13 = vrot.slane %v332_v11, %v163_v51 }
  0x94   :  { %v430_v23 = vcombine.low %v304_v16, %v316_v15 }
  0x95   :  { %v320_v12 = vpop.permute.xlu0 %319 }
  0x96   :  { %v328_v14 = vrot.slane %v320_v12, %v163_v51 }
  0x98   :  { %v431_v20 = vcombine.low %v328_v14, %v340_v13 }
 0x117   :  { %v468_v58 = vpop.f32.mrb[0].mxu0 }
 0x118   :  { %v132_v59 = vpop.f32.mrb[1].mxu0 }
 0x119   :  { %v469_v61 = vpop.f32.mrb[2].mxu0 }
 0x11a   :  { %v148_v62 = vpack.c.bf16 %v469_v61, %v468_v58  ;;  %v135_v63 = vpop.f32.mrb[3].mxu0 }
 0x11b   :  { %v147_v1 = vpack.c.bf16 %v135_v63, %v132_v59 }
 0x11c   :  { %v214_v2 = vadd.bf16 %v425_v60, %v148_v62 }
 0x11d   :  { %v213_v3 = vadd.bf16 %v424_v0, %v147_v1 }
 0x11e   :  { %v216_v6 = vmax.bf16 %v531_v5, %v214_v2 }
 0x11f   :  { %v215_v4 = vmax.bf16 %v531_v5, %v213_v3 }
 0x121   :  { %470 = vmatprep.subr.bf16.mxu1 %v215_v4 }
 0x122   :  { %471 = vmatpush3.bf16.msra.mxu1 %v215_v4 }
 0x123   :  { %472 = vmatprep.subr.bf16.mxu1 %v216_v6 }
 0x126   :  { %473 = vmatpush3.bf16.msra.mxu1 %v216_v6 }
 0x127   :  { %478 = vmatprep.subr.bf16.mxu1 %v533_v8 }
 0x129   :  { %475 = vmatmul.mubr.msk.bf16.vlgmr.msra.gmra.mrb[0].mxu1 %vm231_vm1, %v504_v7 }
 0x12a   :  { %482 = vmatprep.mubr.msk.bf16.mxu1 %vm534_vm2, %v533_v8 }
 0x1fc   :  { %v476_v17 = vpop.f32.mrb[0].mxu1 }
 0x1fd   :  { %v272_v18 = vpop.f32.mrb[1].mxu1 }
 0x1fe   :  { %v477_v19 = vpop.f32.mrb[2].mxu1 }
 0x1ff   :  { %v288_v21 = vpack.c.bf16 %v477_v19, %v476_v17  ;;  %v275_v22 = vpop.f32.mrb[3].mxu1 }
 0x200   :  { %v287_v24 = vpack.c.bf16 %v275_v22, %v272_v18 }
 0x201   :  { %v354_v25 = vadd.bf16 %v431_v20, %v288_v21 }
 0x202   :  { %v353_v26 = vadd.bf16 %v430_v23, %v287_v24 }
 0x203   :  { %v356_v28 = vmax.bf16 %v531_v5, %v354_v25 }
 0x204   :  { %v355_v27 = vmax.bf16 %v531_v5, %v353_v26 }
 0x206   :  { %479 = vmatpush3.bf16.msra.mxu1 %v355_v27 }
 0x207   :  { %480 = vmatprep.subr.bf16.mxu1 %v533_v8 }
 0x20a   :  { %481 = vmatpush3.bf16.msra.mxu1 %v356_v28 }
 0x20d   :  { %483 = vmatmul.mubr.msk.bf16.vlgmr.msra.gmra.mrb[4].mxu1 %vm231_vm1, %v357_v29 }
 0x2e0   :  { %v397_v31 = vpop.f32.mrb[4].mxu1 }
 0x2e1   :  { %v398_v32 = vadd.f32 %v397_v31, %v359_v30  ;;  %v484_v33 = vpop.f32.mrb[5].mxu1 }
 0x2e2   :  { %v400_v34 = vpop.f32.mrb[6].mxu1 }
 0x2e3   :  { %v403_v35 = vmul.f32 1.442695, %v398_v32  ;;  %v485_v36 = vpop.f32.mrb[7].mxu1 }
 0x2e5   :  { %505 = vpow2.f32 %v403_v35 }
 0x2ef   :  { %v506_v5 = vpop.eup %505 }
 0x2f0   :  { %405 = vst [vmem:[#allocation3] sm:$0x1] %v506_v5 }
 0x2f1   :  { %518 = shalt.err (!%p515_p4)
}
 0x2f2   :  { %s519_s13 = scalar_lea.hbm %s712_s7, 16 }
 0x2f3   :  { %p520_p5 = scmp.ne.s32.totalorder %s712_s7, %s519_s13  ;;  %p523_p6 = scmp.lt.u32.totalorder %s519_s13, %s712_s7 }
 0x2f5   :  { %p525_p7 = pnand %p523_p6, %p520_p5 }
 0x2f7   :  { %528 = shalt.err (!%p525_p7)
}
 0x2f8   :  { %415 = dma.vmem_to_hbm [thread:$0]  %s413_s10, 16, %s712_s7, [#allocation4]  }
 0x2f9   :  { %529 = dma.done.wait [#allocation4], 16  }
 0x2fa   :  { %530 = vsyncadd [#allocation4], 4294967280 }
 0x2fb   :  { %419 = vsyncpa [#allocation4], 1 }

</bundles_post_ra>
